<compile_context>
chip_gen: v6e
topology: v6e:2x2x1
jax: 0.10.0
libtpu: 0.0.40
codegen_flags: <defaults>
</compile_context>

<pallas_src>
import functools

import jax
import jax.numpy as jnp
import numpy as np
from jax import lax
from jax.experimental import pallas as pl
from jax.experimental.pallas import tpu as pltpu


def _round_up(n, m):
    return -(-n // m) * m


def _mxu_contract_depth():
    """Native MXU contraction depth: 128 on v2-v5 class chips, 256 on v6e/v7x."""
    try:
        kind = jax.devices()[0].device_kind.lower()
    except Exception:
        return 256
    if any(t in kind for t in ("v2", "v3", "v4", "v5")):
        return 128
    return 256


# -----------------------------------------------------------------------------
# Fused Pallas kernel: all TemporalBlocks + linear head in one call
# -----------------------------------------------------------------------------
@functools.lru_cache(maxsize=None)
def _make_fused_tcn_call(B, L, CP, K, layer_cfgs, mxu_depth):
    """layer_cfgs: tuple of (dilation, has_downsample, cin_pad) per block."""
    CIN0 = layer_cfgs[0][2] if layer_cfgs else CP
    max_pad = max([(K - 1) * d for d, _, _ in layer_cfgs] + [0])
    # Round the causal zero-pad region up to a bf16 sublane-tile multiple so
    # the activation write at row P stays tile aligned.
    P = _round_up(max_pad, 16) if max_pad > 0 else 0
    STAGE_DT = jnp.bfloat16

    def kernel(*refs):
        x_ref = refs[0]
        pos = 1
        layer_refs = []
        for (_, has_down, _) in layer_cfgs:
            n = 6 if has_down else 4
            layer_refs.append(refs[pos:pos + n])
            pos += n
        wh_ref, bh_ref = refs[pos], refs[pos + 1]
        o_ref = refs[pos + 2]
        stage = refs[pos + 3]                      # (P + L, CP) bf16 VMEM scratch

        if P > 0:
            # Zero only the causal-pad rows (not the whole buffer).  Done every
            # grid step so it stays correct when the parallel batch axis is
            # split across TensorCores (each core has its own scratch).
            stage[pl.ds(0, P), :] = jnp.zeros((P, CP), STAGE_DT)

        def causal_conv(h, w_ref, b_ref, dil, cin):
            # Stage the activation (bf16) below P zero rows; tap j of the
            # dilated causal conv reads rows [P - (K-1-j)*dil, ... + L).
            # All slice starts are static Python ints.
            stage[pl.ds(P, L), :cin] = h.astype(STAGE_DT)
            taps = [stage[pl.ds(P - (K - 1 - j) * dil, L), :cin]
                    for j in range(K)]
            if K > 1 and cin < mxu_depth:
                # Wide-K concat fills the MXU contraction (e.g. 2*128 -> 256).
                xs = jnp.concatenate(taps, axis=-1)
                acc = jnp.dot(xs, w_ref[...],
                              preferred_element_type=jnp.float32)
            else:
                # cin already fills the MXU: K accumulating bf16 matmuls read
                # directly off the stage slices — no concat store traffic.
                acc = jnp.dot(taps[0], w_ref[pl.ds(0, cin), :],
                              preferred_element_type=jnp.float32)
                for j in range(1, K):
                    acc = acc + jnp.dot(taps[j], w_ref[pl.ds(j * cin, cin), :],
                                        preferred_element_type=jnp.float32)
            return acc + b_ref[...]

        h = x_ref[0]                               # (L, CIN0) f32
        for (dil, has_down, cin), lrefs in zip(layer_cfgs, layer_refs):
            if has_down:
                w1, b1, w2, b2, wd, bd = lrefs
            else:
                w1, b1, w2, b2 = lrefs
            # conv1 -> chomp -> relu  (dropout == identity in eval mode)
            h1 = jnp.maximum(causal_conv(h, w1, b1, dil, cin), 0.0)
            # TODO(synk): nn.Dropout is stochastic in training; modeled as identity.
            # conv2 -> chomp -> relu
            h2 = jnp.maximum(causal_conv(h1, w2, b2, dil, CP), 0.0)
            # residual branch (1x1 conv when channel counts differ)
            if has_down:
                res = jnp.dot(h.astype(jnp.bfloat16), wd[...],
                              preferred_element_type=jnp.float32) + bd[...]
            else:
                res = h
            h = jnp.maximum(h2 + res, 0.0)

        # Linear head as an M=1 matmul -> lane-dense (1, L) row store.
        y = lax.dot_general(wh_ref[...], h, (((1,), (1,)), ((), ())),
                            preferred_element_type=jnp.float32)   # (1, L)
        o_ref[...] = (y + bh_ref[0]).reshape(1, 1, L).astype(o_ref.dtype)

    const = dict(pipeline_mode=pl.Buffered(1))     # grid-invariant blocks
    in_specs = [pl.BlockSpec((1, L, CIN0), lambda b: (b, 0, 0))]   # x
    for (_, has_down, cin) in layer_cfgs:
        in_specs += [
            pl.BlockSpec((K * cin, CP), lambda b: (0, 0), **const),  # packed w1
            pl.BlockSpec((1, CP), lambda b: (0, 0), **const),        # b1
            pl.BlockSpec((K * CP, CP), lambda b: (0, 0), **const),   # packed w2
            pl.BlockSpec((1, CP), lambda b: (0, 0), **const),        # b2
        ]
        if has_down:
            in_specs += [
                pl.BlockSpec((cin, CP), lambda b: (0, 0), **const),  # downsample w
                pl.BlockSpec((1, CP), lambda b: (0, 0), **const),    # downsample b
            ]
    in_specs += [
        pl.BlockSpec((1, CP), lambda b: (0, 0), **const),            # head weight
        pl.BlockSpec(memory_space=pltpu.MemorySpace.SMEM),           # head bias
    ]

    # --- explicit VMEM budget (capped at v7x's 64 MiB physical VMEM) ---------
    w_bytes = 0
    for (_, has_down, cin) in layer_cfgs:
        w_bytes += (K * cin * CP + K * CP * CP) * 2 + 2 * CP * 4
        if has_down:
            w_bytes += cin * CP * 2 + CP * 4
    w_bytes += CP * 4 + 4
    live = (w_bytes
            + 2 * L * CIN0 * 4            # double-buffered x block
            + 2 * L * 4                   # double-buffered out block
            + (P + L) * CP * 2            # bf16 stage scratch
            + (2 * K + 10) * L * CP * 4)  # generous bound on live intermediates
    vmem_limit = int(min(64 * 1024 * 1024,
                         max(32 * 1024 * 1024, int(live * 1.25))))
    # TODO(synk): for very large L*CP this budget can exceed 64 MiB on v7x; the
    # fix is tiling causal_conv over L-chunks read out of the stage buffer.

    flops = 0
    for (_, has_down, cin) in layer_cfgs:
        flops += 2 * L * (K * cin) * CP + 2 * L * (K * CP) * CP
        if has_down:
            flops += 2 * L * cin * CP
    flops = B * (flops + 2 * L * CP)
    bytes_accessed = B * L * CIN0 * 4 + w_bytes + B * L * 4

    return pl.pallas_call(
        kernel,
        out_shape=jax.ShapeDtypeStruct((B, 1, L), jnp.float32),
        grid=(B,),
        in_specs=in_specs,
        out_specs=pl.BlockSpec((1, 1, L), lambda b: (b, 0, 0)),
        scratch_shapes=[pltpu.VMEM((P + L, CP), STAGE_DT)],
        compiler_params=pltpu.CompilerParams(
            # TODO(synk): if B == 1 on v7x (2 TCs), split L into two haloed
            # halves so both cores stay busy.
            dimension_semantics=("parallel",),
            vmem_limit_bytes=vmem_limit),
        cost_estimate=pl.CostEstimate(flops=int(flops), transcendentals=0,
                                      bytes_accessed=int(bytes_accessed)),
    )


# -----------------------------------------------------------------------------
# Parameter setup / packing (glue, plain JAX — jitted together with the call)
# -----------------------------------------------------------------------------
def _wn(v, g):
    """weight_norm (dim=0): w[o] = g[o] * v[o] / ||v[o]||."""
    norm = jnp.sqrt(jnp.sum(v * v, axis=(1, 2), keepdims=True))
    return (g[:, None, None] / norm) * v


def _pack_conv_w(w_eff, cin_pad, cout_pad):
    """(c_out, c_in, k) conv weight -> (k*cin_pad, cout_pad) bf16 packed matmul
    weight; rows [j*cin_pad:(j+1)*cin_pad] = tap j; padded channels are exact
    zeros (they stay zero through every layer)."""
    c_out, c_in, k = w_eff.shape
    wt = jnp.transpose(w_eff, (2, 1, 0))                       # (k, c_in, c_out)
    wt = jnp.pad(wt, ((0, 0), (0, cin_pad - c_in), (0, cout_pad - c_out)))
    return wt.reshape(k * cin_pad, cout_pad).astype(jnp.bfloat16)


def _pad_row(v, CP):
    """(c,) -> (1, CP) zero-padded f32."""
    return jnp.pad(v[None, :].astype(jnp.float32), ((0, 0), (0, CP - v.shape[0])))


def init_params(key, num_inputs, num_channels, kernel_size):
    params = []
    c_prev = num_inputs
    for i, c_out in enumerate(num_channels):
        key, k1, k2, k3, k4, k5, k6, k7, k8 = jax.random.split(key, 9)
        layer = dict(
            v1=0.01 * jax.random.normal(k1, (c_out, c_prev, kernel_size), jnp.float32),
            g1=1.0 + 0.1 * jax.random.normal(k2, (c_out,), jnp.float32),
            b1=0.05 * jax.random.normal(k3, (c_out,), jnp.float32),
            v2=0.01 * jax.random.normal(k4, (c_out, c_out, kernel_size), jnp.float32),
            g2=1.0 + 0.1 * jax.random.normal(k5, (c_out,), jnp.float32),
            b2=0.05 * jax.random.normal(k6, (c_out,), jnp.float32),
        )
        if c_prev != c_out:
            layer["wd"] = 0.01 * jax.random.normal(k7, (c_out, c_prev, 1), jnp.float32)
            layer["bd"] = 0.05 * jax.random.normal(k8, (c_out,), jnp.float32)
        params.append(layer)
        c_prev = c_out
    key, kh1, kh2 = jax.random.split(key, 3)
    head = (0.1 * jax.random.normal(kh1, (1, c_prev), jnp.float32),
            0.05 * jax.random.normal(kh2, (1,), jnp.float32))
    return params, head


# -----------------------------------------------------------------------------
# Forward pass using the fused Pallas kernel
# -----------------------------------------------------------------------------
def temporal_conv_net_forward(x_ncl, params, head, num_channels, kernel_size):
    B, c_in, L = x_ncl.shape
    num_channels = list(num_channels)
    CP = _round_up(max([c_in] + num_channels), 128)            # hidden lane width
    # Layer-0 input only needs round_up(c_in, 128) lanes, except when layer 0
    # has an identity residual (c_in == channels[0]) which must match CP.
    CIN0 = _round_up(c_in, 128)
    if not num_channels or c_in == num_channels[0]:
        CIN0 = CP

    # One-time channel pad at the boundary; activations stay lane-dense after.
    x = jnp.transpose(x_ncl, (0, 2, 1)).astype(jnp.float32)    # (B, L, C)
    x = jnp.pad(x, ((0, 0), (0, 0), (0, CIN0 - c_in)))         # (B, L, CIN0)

    flat_args = [x]
    layer_cfgs = []
    c_prev, cin_pad = c_in, CIN0
    for i, (layer, c_out) in enumerate(zip(params, num_channels)):
        dilation = 2 ** i
        has_down = c_prev != c_out
        flat_args += [
            _pack_conv_w(_wn(layer["v1"], layer["g1"]), cin_pad, CP),
            _pad_row(layer["b1"], CP),
            _pack_conv_w(_wn(layer["v2"], layer["g2"]), CP, CP),
            _pad_row(layer["b2"], CP),
        ]
        if has_down:
            wd = jnp.transpose(layer["wd"][:, :, 0], (1, 0))   # (c_in, c_out)
            wd = jnp.pad(wd, ((0, cin_pad - c_prev), (0, CP - c_out)))
            flat_args += [wd.astype(jnp.bfloat16), _pad_row(layer["bd"], CP)]
        layer_cfgs.append((dilation, has_down, cin_pad))
        c_prev, cin_pad = c_out, CP

    head_w, head_b = head
    flat_args += [_pad_row(head_w[0], CP),
                  head_b.reshape(1).astype(jnp.float32)]       # SMEM scalar bias

    call = _make_fused_tcn_call(B, L, CP, kernel_size, tuple(layer_cfgs),
                                _mxu_contract_depth())
    return call(*flat_args)                                    # (B, 1, L)


# -----------------------------------------------------------------------------
# Pure-JAX reference (f32, for verification)
# -----------------------------------------------------------------------------
def _conv1d_ref(x, w, b, dilation, padding):
    y = jax.lax.conv_general_dilated(
        x, w, window_strides=(1,), padding=[(padding, padding)],
        rhs_dilation=(dilation,), dimension_numbers=("NCH", "OIH", "NCH"))
    y = y + b[None, :, None]
    return y[:, :, : x.shape[2]]   # chomp


def reference_forward(x_ncl, params, head, num_channels, kernel_size):
    x = x_ncl.astype(jnp.float32)
    for i, (layer, c_out) in enumerate(zip(params, num_channels)):
        dilation = 2 ** i
        pad = (kernel_size - 1) * dilation
        w1 = _wn(layer["v1"], layer["g1"])
        w2 = _wn(layer["v2"], layer["g2"])
        h = jax.nn.relu(_conv1d_ref(x, w1, layer["b1"], dilation, pad))
        h = jax.nn.relu(_conv1d_ref(h, w2, layer["b2"], dilation, pad))
        res = _conv1d_ref(x, layer["wd"], layer["bd"], 1, 0) if "wd" in layer else x
        x = jax.nn.relu(h + res)
    head_w, head_b = head
    return jnp.einsum("bcl,oc->bol", x, head_w) + head_b[None, :, None]


# -----------------------------------------------------------------------------
if __name__ == "__main__":
    B, C_IN, L = 2, 4, 16
    NUM_CHANNELS = (8, 8)
    KERNEL_SIZE = 2

    key = jax.random.PRNGKey(0)
    key, xkey = jax.random.split(key)
    x = jax.random.normal(xkey, (B, C_IN, L), jnp.float32)

    params, head = init_params(key, C_IN, NUM_CHANNELS, KERNEL_SIZE)

    # jit the whole forward so weight-norm / bf16 packing fuse with the kernel
    # launch instead of running as separate per-call XLA ops.
    fwd = jax.jit(lambda xx, pp, hh: temporal_conv_net_forward(
        xx, pp, hh, NUM_CHANNELS, KERNEL_SIZE))
    out = jax.block_until_ready(fwd(x, params, head))

    ref = jax.block_until_ready(
        reference_forward(x, params, head, NUM_CHANNELS, KERNEL_SIZE))
    # Tolerance loosened for the bf16 MXU path (reference is pure f32).
    np.testing.assert_allclose(np.asarray(out), np.asarray(ref),
                               rtol=2e-2, atol=2e-2)
    assert out.shape == (B, 1, L)
    print("KERNEL_OK")
</pallas_src>

<mosaic_0001>
module attributes {stable_mosaic.version = 11 : i64} {
  func.func @kernel(%arg0: i32, %arg1: memref<1x16x128xf32, #tpu.memory_space<vmem>>, %arg2: memref<256x128xbf16, #tpu.memory_space<vmem>>, %arg3: memref<1x128xf32, #tpu.memory_space<vmem>>, %arg4: memref<256x128xbf16, #tpu.memory_space<vmem>>, %arg5: memref<1x128xf32, #tpu.memory_space<vmem>>, %arg6: memref<128x128xbf16, #tpu.memory_space<vmem>>, %arg7: memref<1x128xf32, #tpu.memory_space<vmem>>, %arg8: memref<256x128xbf16, #tpu.memory_space<vmem>>, %arg9: memref<1x128xf32, #tpu.memory_space<vmem>>, %arg10: memref<256x128xbf16, #tpu.memory_space<vmem>>, %arg11: memref<1x128xf32, #tpu.memory_space<vmem>>, %arg12: memref<1x128xf32, #tpu.memory_space<vmem>>, %arg13: memref<1xf32, #tpu.memory_space<smem>>, %arg14: memref<1x1x16xf32, #tpu.memory_space<vmem>>, %arg15: memref<32x128xbf16, #tpu.memory_space<vmem>>) attributes {dimension_semantics = [#tpu.dimension_semantics<parallel>], iteration_bounds = array<i64: 2>, scalar_prefetch = 0 : i64, scratch_operands = 1 : i64, tpu.core_type = #tpu.core_type<tc>, window_params = [{transform_indices = @transform_0, window_bounds = array<i64: 1, 16, 128>}, {pipeline_mode = #tpu.pipeline_mode<synchronous>, transform_indices = @transform_1, window_bounds = array<i64: 256, 128>}, {pipeline_mode = #tpu.pipeline_mode<synchronous>, transform_indices = @transform_2, window_bounds = array<i64: 1, 128>}, {pipeline_mode = #tpu.pipeline_mode<synchronous>, transform_indices = @transform_3, window_bounds = array<i64: 256, 128>}, {pipeline_mode = #tpu.pipeline_mode<synchronous>, transform_indices = @transform_4, window_bounds = array<i64: 1, 128>}, {pipeline_mode = #tpu.pipeline_mode<synchronous>, transform_indices = @transform_5, window_bounds = array<i64: 128, 128>}, {pipeline_mode = #tpu.pipeline_mode<synchronous>, transform_indices = @transform_6, window_bounds = array<i64: 1, 128>}, {pipeline_mode = #tpu.pipeline_mode<synchronous>, transform_indices = @transform_7, window_bounds = array<i64: 256, 128>}, {pipeline_mode = #tpu.pipeline_mode<synchronous>, transform_indices = @transform_8, window_bounds = array<i64: 1, 128>}, {pipeline_mode = #tpu.pipeline_mode<synchronous>, transform_indices = @transform_9, window_bounds = array<i64: 256, 128>}, {pipeline_mode = #tpu.pipeline_mode<synchronous>, transform_indices = @transform_10, window_bounds = array<i64: 1, 128>}, {pipeline_mode = #tpu.pipeline_mode<synchronous>, transform_indices = @transform_11, window_bounds = array<i64: 1, 128>}, {transform_indices = @transform_12, window_bounds = array<i64: 1>}, {transform_indices = @transform_13, window_bounds = array<i64: 1, 1, 16>}]} {
    %cst = arith.constant 0.000000e+00 : bf16
    %0 = vector.broadcast %cst : bf16 to vector<16x128xbf16>
    %c0 = arith.constant 0 : index
    %c0_0 = arith.constant 0 : index
    %1 = vector.load %arg15[%c0, %c0_0] : memref<32x128xbf16, #tpu.memory_space<vmem>>, vector<16x128xbf16>
    tpu.vector_store %arg15[%c0, %c0_0], %0 {strides = array<i32>} : memref<32x128xbf16, #tpu.memory_space<vmem>>, vector<16x128xbf16>,
    %c0_1 = arith.constant 0 : index
    %c0_2 = arith.constant 0 : index
    %c0_3 = arith.constant 0 : index
    %2 = vector.load %arg1[%c0_1, %c0_2, %c0_3] : memref<1x16x128xf32, #tpu.memory_space<vmem>>, vector<1x16x128xf32>
    %3 = vector.shape_cast %2 : vector<1x16x128xf32> to vector<16x128xf32>
    %4 = arith.truncf %3 : vector<16x128xf32> to vector<16x128xbf16>
    %c16 = arith.constant 16 : index
    %c0_4 = arith.constant 0 : index
    %5 = vector.load %arg15[%c16, %c0_4] : memref<32x128xbf16, #tpu.memory_space<vmem>>, vector<16x128xbf16>
    tpu.vector_store %arg15[%c16, %c0_4], %4 {strides = array<i32>} : memref<32x128xbf16, #tpu.memory_space<vmem>>, vector<16x128xbf16>,
    %c15 = arith.constant 15 : index
    %c0_5 = arith.constant 0 : index
    %6 = vector.load %arg15[%c15, %c0_5] : memref<32x128xbf16, #tpu.memory_space<vmem>>, vector<16x128xbf16>
    %c16_6 = arith.constant 16 : index
    %c0_7 = arith.constant 0 : index
    %7 = vector.load %arg15[%c16_6, %c0_7] : memref<32x128xbf16, #tpu.memory_space<vmem>>, vector<16x128xbf16>
    %8 = tpu.concatenate %6, %7 in 1 : vector<16x128xbf16>, vector<16x128xbf16> -> vector<16x256xbf16>
    %c0_8 = arith.constant 0 : index
    %c0_9 = arith.constant 0 : index
    %9 = vector.load %arg2[%c0_8, %c0_9] : memref<256x128xbf16, #tpu.memory_space<vmem>>, vector<256x128xbf16>
    %cst_10 = arith.constant dense<0.000000e+00> : vector<16x128xf32>
    %10 = tpu.matmul %8, %9, %cst_10 {dimension_numbers = #tpu.dot_dimension_numbers<[1], [0], [0], [1], [0, 0, 1, 1], [], []>} : vector<16x256xbf16>, vector<256x128xbf16>, vector<16x128xf32> -> vector<16x128xf32>
    %c0_11 = arith.constant 0 : index
    %c0_12 = arith.constant 0 : index
    %11 = vector.load %arg3[%c0_11, %c0_12] : memref<1x128xf32, #tpu.memory_space<vmem>>, vector<1x128xf32>
    %12 = vector.broadcast %11 : vector<1x128xf32> to vector<16x128xf32>
    %13 = arith.addf %10, %12 : vector<16x128xf32>
    %cst_13 = arith.constant 0.000000e+00 : f32
    %14 = vector.broadcast %cst_13 : f32 to vector<16x128xf32>
    %15 = arith.maximumf %13, %14 : vector<16x128xf32>
    %16 = arith.truncf %15 : vector<16x128xf32> to vector<16x128xbf16>
    %c16_14 = arith.constant 16 : index
    %c0_15 = arith.constant 0 : index
    %17 = vector.load %arg15[%c16_14, %c0_15] : memref<32x128xbf16, #tpu.memory_space<vmem>>, vector<16x128xbf16>
    tpu.vector_store %arg15[%c16_14, %c0_15], %16 {strides = array<i32>} : memref<32x128xbf16, #tpu.memory_space<vmem>>, vector<16x128xbf16>,
    %c15_16 = arith.constant 15 : index
    %c0_17 = arith.constant 0 : index
    %18 = vector.load %arg15[%c15_16, %c0_17] : memref<32x128xbf16, #tpu.memory_space<vmem>>, vector<16x128xbf16>
    %c16_18 = arith.constant 16 : index
    %c0_19 = arith.constant 0 : index
    %19 = vector.load %arg15[%c16_18, %c0_19] : memref<32x128xbf16, #tpu.memory_space<vmem>>, vector<16x128xbf16>
    %20 = tpu.concatenate %18, %19 in 1 : vector<16x128xbf16>, vector<16x128xbf16> -> vector<16x256xbf16>
    %c0_20 = arith.constant 0 : index
    %c0_21 = arith.constant 0 : index
    %21 = vector.load %arg4[%c0_20, %c0_21] : memref<256x128xbf16, #tpu.memory_space<vmem>>, vector<256x128xbf16>
    %cst_22 = arith.constant dense<0.000000e+00> : vector<16x128xf32>
    %22 = tpu.matmul %20, %21, %cst_22 {dimension_numbers = #tpu.dot_dimension_numbers<[1], [0], [0], [1], [0, 0, 1, 1], [], []>} : vector<16x256xbf16>, vector<256x128xbf16>, vector<16x128xf32> -> vector<16x128xf32>
    %c0_23 = arith.constant 0 : index
    %c0_24 = arith.constant 0 : index
    %23 = vector.load %arg5[%c0_23, %c0_24] : memref<1x128xf32, #tpu.memory_space<vmem>>, vector<1x128xf32>
    %24 = vector.broadcast %23 : vector<1x128xf32> to vector<16x128xf32>
    %25 = arith.addf %22, %24 : vector<16x128xf32>
    %cst_25 = arith.constant 0.000000e+00 : f32
    %26 = vector.broadcast %cst_25 : f32 to vector<16x128xf32>
    %27 = arith.maximumf %25, %26 : vector<16x128xf32>
    %28 = arith.truncf %3 : vector<16x128xf32> to vector<16x128xbf16>
    %c0_26 = arith.constant 0 : index
    %c0_27 = arith.constant 0 : index
    %29 = vector.load %arg6[%c0_26, %c0_27] : memref<128x128xbf16, #tpu.memory_space<vmem>>, vector<128x128xbf16>
    %cst_28 = arith.constant dense<0.000000e+00> : vector<16x128xf32>
    %30 = tpu.matmul %28, %29, %cst_28 {dimension_numbers = #tpu.dot_dimension_numbers<[1], [0], [0], [1], [0, 0, 1, 1], [], []>} : vector<16x128xbf16>, vector<128x128xbf16>, vector<16x128xf32> -> vector<16x128xf32>
    %c0_29 = arith.constant 0 : index
    %c0_30 = arith.constant 0 : index
    %31 = vector.load %arg7[%c0_29, %c0_30] : memref<1x128xf32, #tpu.memory_space<vmem>>, vector<1x128xf32>
    %32 = vector.broadcast %31 : vector<1x128xf32> to vector<16x128xf32>
    %33 = arith.addf %30, %32 : vector<16x128xf32>
    %34 = arith.addf %27, %33 : vector<16x128xf32>
    %cst_31 = arith.constant 0.000000e+00 : f32
    %35 = vector.broadcast %cst_31 : f32 to vector<16x128xf32>
    %36 = arith.maximumf %34, %35 : vector<16x128xf32>
    %37 = arith.truncf %36 : vector<16x128xf32> to vector<16x128xbf16>
    %c16_32 = arith.constant 16 : index
    %c0_33 = arith.constant 0 : index
    %38 = vector.load %arg15[%c16_32, %c0_33] : memref<32x128xbf16, #tpu.memory_space<vmem>>, vector<16x128xbf16>
    tpu.vector_store %arg15[%c16_32, %c0_33], %37 {strides = array<i32>} : memref<32x128xbf16, #tpu.memory_space<vmem>>, vector<16x128xbf16>,
    %c14 = arith.constant 14 : index
    %c0_34 = arith.constant 0 : index
    %39 = vector.load %arg15[%c14, %c0_34] : memref<32x128xbf16, #tpu.memory_space<vmem>>, vector<16x128xbf16>
    %c16_35 = arith.constant 16 : index
    %c0_36 = arith.constant 0 : index
    %40 = vector.load %arg15[%c16_35, %c0_36] : memref<32x128xbf16, #tpu.memory_space<vmem>>, vector<16x128xbf16>
    %41 = tpu.concatenate %39, %40 in 1 : vector<16x128xbf16>, vector<16x128xbf16> -> vector<16x256xbf16>
    %c0_37 = arith.constant 0 : index
    %c0_38 = arith.constant 0 : index
    %42 = vector.load %arg8[%c0_37, %c0_38] : memref<256x128xbf16, #tpu.memory_space<vmem>>, vector<256x128xbf16>
    %cst_39 = arith.constant dense<0.000000e+00> : vector<16x128xf32>
    %43 = tpu.matmul %41, %42, %cst_39 {dimension_numbers = #tpu.dot_dimension_numbers<[1], [0], [0], [1], [0, 0, 1, 1], [], []>} : vector<16x256xbf16>, vector<256x128xbf16>, vector<16x128xf32> -> vector<16x128xf32>
    %c0_40 = arith.constant 0 : index
    %c0_41 = arith.constant 0 : index
    %44 = vector.load %arg9[%c0_40, %c0_41] : memref<1x128xf32, #tpu.memory_space<vmem>>, vector<1x128xf32>
    %45 = vector.broadcast %44 : vector<1x128xf32> to vector<16x128xf32>
    %46 = arith.addf %43, %45 : vector<16x128xf32>
    %cst_42 = arith.constant 0.000000e+00 : f32
    %47 = vector.broadcast %cst_42 : f32 to vector<16x128xf32>
    %48 = arith.maximumf %46, %47 : vector<16x128xf32>
    %49 = arith.truncf %48 : vector<16x128xf32> to vector<16x128xbf16>
    %c16_43 = arith.constant 16 : index
    %c0_44 = arith.constant 0 : index
    %50 = vector.load %arg15[%c16_43, %c0_44] : memref<32x128xbf16, #tpu.memory_space<vmem>>, vector<16x128xbf16>
    tpu.vector_store %arg15[%c16_43, %c0_44], %49 {strides = array<i32>} : memref<32x128xbf16, #tpu.memory_space<vmem>>, vector<16x128xbf16>,
    %c14_45 = arith.constant 14 : index
    %c0_46 = arith.constant 0 : index
    %51 = vector.load %arg15[%c14_45, %c0_46] : memref<32x128xbf16, #tpu.memory_space<vmem>>, vector<16x128xbf16>
    %c16_47 = arith.constant 16 : index
    %c0_48 = arith.constant 0 : index
    %52 = vector.load %arg15[%c16_47, %c0_48] : memref<32x128xbf16, #tpu.memory_space<vmem>>, vector<16x128xbf16>
    %53 = tpu.concatenate %51, %52 in 1 : vector<16x128xbf16>, vector<16x128xbf16> -> vector<16x256xbf16>
    %c0_49 = arith.constant 0 : index
    %c0_50 = arith.constant 0 : index
    %54 = vector.load %arg10[%c0_49, %c0_50] : memref<256x128xbf16, #tpu.memory_space<vmem>>, vector<256x128xbf16>
    %cst_51 = arith.constant dense<0.000000e+00> : vector<16x128xf32>
    %55 = tpu.matmul %53, %54, %cst_51 {dimension_numbers = #tpu.dot_dimension_numbers<[1], [0], [0], [1], [0, 0, 1, 1], [], []>} : vector<16x256xbf16>, vector<256x128xbf16>, vector<16x128xf32> -> vector<16x128xf32>
    %c0_52 = arith.constant 0 : index
    %c0_53 = arith.constant 0 : index
    %56 = vector.load %arg11[%c0_52, %c0_53] : memref<1x128xf32, #tpu.memory_space<vmem>>, vector<1x128xf32>
    %57 = vector.broadcast %56 : vector<1x128xf32> to vector<16x128xf32>
    %58 = arith.addf %55, %57 : vector<16x128xf32>
    %cst_54 = arith.constant 0.000000e+00 : f32
    %59 = vector.broadcast %cst_54 : f32 to vector<16x128xf32>
    %60 = arith.maximumf %58, %59 : vector<16x128xf32>
    %61 = arith.addf %60, %36 : vector<16x128xf32>
    %cst_55 = arith.constant 0.000000e+00 : f32
    %62 = vector.broadcast %cst_55 : f32 to vector<16x128xf32>
    %63 = arith.maximumf %61, %62 : vector<16x128xf32>
    %c0_56 = arith.constant 0 : index
    %c0_57 = arith.constant 0 : index
    %64 = vector.load %arg12[%c0_56, %c0_57] : memref<1x128xf32, #tpu.memory_space<vmem>>, vector<1x128xf32>
    %cst_58 = arith.constant dense<0.000000e+00> : vector<1x16xf32>
    %65 = tpu.matmul %64, %63, %cst_58 {dimension_numbers = #tpu.dot_dimension_numbers<[1], [1], [0], [0], [0, 0, 1, 0], [], []>} : vector<1x128xf32>, vector<16x128xf32>, vector<1x16xf32> -> vector<1x16xf32>
    %c0_59 = arith.constant 0 : index
    %66 = memref.load %arg13[%c0_59] : memref<1xf32, #tpu.memory_space<smem>>
    %67 = vector.broadcast %66 : f32 to vector<1x16xf32>
    %68 = arith.addf %65, %67 : vector<1x16xf32>
    %69 = vector.shape_cast %68 : vector<1x16xf32> to vector<1x1x16xf32>
    %c0_60 = arith.constant 0 : index
    %c0_61 = arith.constant 0 : index
    %c0_62 = arith.constant 0 : index
    %70 = vector.load %arg14[%c0_60, %c0_61, %c0_62] : memref<1x1x16xf32, #tpu.memory_space<vmem>>, vector<1x1x16xf32>
    tpu.vector_store %arg14[%c0_60, %c0_61, %c0_62], %69 {strides = array<i32>} : memref<1x1x16xf32, #tpu.memory_space<vmem>>, vector<1x1x16xf32>,
    return
  }
  func.func @transform_0(%arg0: i32) -> (i32, i32, i32) {
    %c0_i32 = arith.constant 0 : i32
    %c0_i32_0 = arith.constant 0 : i32
    %c0_i32_1 = arith.constant 0 : i32
    return %arg0, %c0_i32, %c0_i32_0 : i32, i32, i32
  }
  func.func @transform_1(%arg0: i32) -> (i32, i32) {
    %c0_i32 = arith.constant 0 : i32
    %c0_i32_0 = arith.constant 0 : i32
    %c0_i32_1 = arith.constant 0 : i32
    return %c0_i32, %c0_i32_0 : i32, i32
  }
  func.func @transform_2(%arg0: i32) -> (i32, i32) {
    %c0_i32 = arith.constant 0 : i32
    %c0_i32_0 = arith.constant 0 : i32
    %c0_i32_1 = arith.constant 0 : i32
    return %c0_i32, %c0_i32_0 : i32, i32
  }
  func.func @transform_3(%arg0: i32) -> (i32, i32) {
    %c0_i32 = arith.constant 0 : i32
    %c0_i32_0 = arith.constant 0 : i32
    %c0_i32_1 = arith.constant 0 : i32
    return %c0_i32, %c0_i32_0 : i32, i32
  }
  func.func @transform_4(%arg0: i32) -> (i32, i32) {
    %c0_i32 = arith.constant 0 : i32
    %c0_i32_0 = arith.constant 0 : i32
    %c0_i32_1 = arith.constant 0 : i32
    return %c0_i32, %c0_i32_0 : i32, i32
  }
  func.func @transform_5(%arg0: i32) -> (i32, i32) {
    %c0_i32 = arith.constant 0 : i32
    %c0_i32_0 = arith.constant 0 : i32
    %c0_i32_1 = arith.constant 0 : i32
    return %c0_i32, %c0_i32_0 : i32, i32
  }
  func.func @transform_6(%arg0: i32) -> (i32, i32) {
    %c0_i32 = arith.constant 0 : i32
    %c0_i32_0 = arith.constant 0 : i32
    %c0_i32_1 = arith.constant 0 : i32
    return %c0_i32, %c0_i32_0 : i32, i32
  }
  func.func @transform_7(%arg0: i32) -> (i32, i32) {
    %c0_i32 = arith.constant 0 : i32
    %c0_i32_0 = arith.constant 0 : i32
    %c0_i32_1 = arith.constant 0 : i32
    return %c0_i32, %c0_i32_0 : i32, i32
  }
  func.func @transform_8(%arg0: i32) -> (i32, i32) {
    %c0_i32 = arith.constant 0 : i32
    %c0_i32_0 = arith.constant 0 : i32
    %c0_i32_1 = arith.constant 0 : i32
    return %c0_i32, %c0_i32_0 : i32, i32
  }
  func.func @transform_9(%arg0: i32) -> (i32, i32) {
    %c0_i32 = arith.constant 0 : i32
    %c0_i32_0 = arith.constant 0 : i32
    %c0_i32_1 = arith.constant 0 : i32
    return %c0_i32, %c0_i32_0 : i32, i32
  }
  func.func @transform_10(%arg0: i32) -> (i32, i32) {
    %c0_i32 = arith.constant 0 : i32
    %c0_i32_0 = arith.constant 0 : i32
    %c0_i32_1 = arith.constant 0 : i32
    return %c0_i32, %c0_i32_0 : i32, i32
  }
  func.func @transform_11(%arg0: i32) -> (i32, i32) {
    %c0_i32 = arith.constant 0 : i32
    %c0_i32_0 = arith.constant 0 : i32
    %c0_i32_1 = arith.constant 0 : i32
    return %c0_i32, %c0_i32_0 : i32, i32
  }
  func.func @transform_12(%arg0: i32) -> i32 {
    %c0_i32 = arith.constant 0 : i32
    %c0_i32_0 = arith.constant 0 : i32
    return %c0_i32 : i32
  }
  func.func @transform_13(%arg0: i32) -> (i32, i32, i32) {
    %c0_i32 = arith.constant 0 : i32
    %c0_i32_0 = arith.constant 0 : i32
    %c0_i32_1 = arith.constant 0 : i32
    return %arg0, %c0_i32, %c0_i32_0 : i32, i32, i32
  }
}

</mosaic_0001>

<bundles_post_ra>
// kernel: _lambda_.1
= control target key start
LH: loop header
LB: loop body
LE: loop exit
PB: predicated region body
PF: predicated region fallthrough
CT: control target
= control target key end

     0   :  { %s2498_s0 = inlined_call_operand.vmem [shape: f32[2,16,128], index: 0, kind: input, shape index: {}]   ;;  %s2499_s1 = inlined_call_operand.vmem [shape: bf16[256,128], index: 1, kind: input, shape index: {}]   ;;  %s2500_s2 = inlined_call_operand.vmem [shape: f32[1,128], index: 2, kind: input, shape index: {}]   ;;  %s2501_s3 = inlined_call_operand.vmem [shape: bf16[256,128], index: 3, kind: input, shape index: {}]   ;;  %s2502_s4 = inlined_call_operand.vmem [shape: f32[1,128], index: 4, kind: input, shape index: {}]   ;;  %s2503_s5 = inlined_call_operand.vmem [shape: bf16[128,128], index: 5, kind: input, shape index: {}]   ;;  %s2504_s6 = inlined_call_operand.vmem [shape: f32[1,128], index: 6, kind: input, shape index: {}]   ;;  %s2505_s7 = inlined_call_operand.vmem [shape: bf16[256,128], index: 7, kind: input, shape index: {}]   ;;  %s2506_s8 = inlined_call_operand.vmem [shape: f32[1,128], index: 8, kind: input, shape index: {}]   ;;  %s2507_s9 = inlined_call_operand.vmem [shape: bf16[256,128], index: 9, kind: input, shape index: {}]   ;;  %s2508_s10 = inlined_call_operand.vmem [shape: f32[1,128], index: 10, kind: input, shape index: {}]   ;;  %s2509_s11 = inlined_call_operand.vmem [shape: f32[1,128], index: 11, kind: input, shape index: {}]   ;;  %s2510_s12 = inlined_call_operand.<no memory space> [shape: f32[1], index: 12, kind: input, shape index: {}]   ;;  %s2511_s13 = inlined_call_operand.hbm [shape: f32[2,1,16], index: 13, kind: output, shape index: {}]  }
   0x1   :  { %18 = sst [smem:[#allocation3]] %s2510_s12 }
   0x2   :  { %19 = vsyncpa [#allocation5], 0 }
   0x3   :  { %21 = vsyncpa [#allocation5 + $0x1], 0  ;;  %s2135_s27 = smov 0   ;;  %s2137_s28 = smov 0  }
   0x4   :  { %s2139_s29 = smov 0   ;;  %s2141_s30 = smov 0  }
   0x5 LB: > { %2516 = sst [smem:[#allocation7_spill]] %s2052_s29  ;;  %s2156_s12 = sadd.s32 4294967295, %s2056_s30   ;;  %s2056_s30 = sphi %s2141_s30, %s2523_s30   ;;  %s2052_s29 = sphi %s2139_s29, %s2525_s29   ;;  %s2048_s28 = sphi %s2137_s28, %s2527_s28   ;;  %s2044_s27 = sphi %s2135_s27, %s2526_s27  }
   0x6   : > { %s1603_s14 = sadd.s32 4294967294, %s2056_s30   ;;  %s2160_s15 = sadd.s32 1, %s2056_s30  }
   0x7   : > { %2517 = sst [smem:[#allocation8_spill]] %s2160_s15  ;;  %s312_s16 = sadd.s32 1, %s2052_s29 }
   0x8   : > { %s309_s17 = ssub.s32 %s2056_s30, %s2160_s15  ;;  %p322_p0 = scmp.ne.s32.totalorder %s2052_s29, %s2048_s28 }
   0x9   : > { %p310_p1 = scmp.eq.s32.totalorder %s309_s17, 0  ;;  %p323_p2 = scmp.eq.s32.totalorder %s2156_s12, 1 }
   0xa   : > { %p328_p3 = scmp.ne.s32.totalorder %s2048_s28, %s2044_s27  ;;  %p329_p4 = scmp.eq.s32.totalorder %s1603_s14, 1 }
   0xb   : > { %s2171_s18 = scalar_select %p310_p1, %s2052_s29, %s312_s16  }
   0xc   : > { %p2173_p5 = por %p323_p2, %p322_p0  ;;  %p2177_p6 = por %p329_p4, %p328_p3 }
   0xd   : > { %2518 = sst [smem:[#allocation9_spill]] %s2171_s18  ;;  %p1606_p7 = scmp.ge.s32.totalorder %s2056_s30, 1 }
   0xe   : > { %s2520_s20 = scalar_select %p2177_p6, 1, 0 }
   0xf   : > { %p391_p8 = scmp.lt.s32.totalorder %s2056_s30, 3 }
  0x10   : > { %2521 = sst [smem:[#allocation10_spill]] %s2520_s20 }
  0x11   : > { %p392_p9 = pnand %p1606_p7, %p391_p8 }
  0x12   : > { %p434_p10 = scmp.lt.s32.totalorder (!%p392_p9), %s2156_s12, 1  ;;  %s432_s20 = sand.u32 (!%p392_p9), 1, %s2048_s28  }
  0x13   : > { %395 = sbr.rel (%p392_p9) target bundleno = 1155 (0x483), region = 72  ;;  %s1708_s16 = sshll.u32 (!%p392_p9), %s2156_s12, 4 }
  0x14   : > { %s433_s17 = scalar_lea.vmem (!%p392_p9), [#allocation4], %s432_s20  ;;  %s1536_s25 = scalar_lea.sflag (!%p392_p9), [#allocation5], %s432_s20 }
  0x15   : > { %s1548_s21 = sshll.u32 (!%p392_p9), %s433_s17, 4  ;;  %s1549_s21 = int_to_ptr.vmem [resolvable:$true] %s1548_s21 }
  0x16   : > { %s1996_s26 = scalar_lea.vmem (!%p392_p9), %s1549_s21, 16 }
  0x17   : > { %p1997_p11 = scmp.ne.s32.totalorder (!%p392_p9), %s1549_s21, %s1996_s26 }
  0x18   : > { %v1913_v0 = vld [vmem:[%s2499_s1 + $0x78] sm:$0xff]   ;;  %v1915_v2 = vld [vmem:[%s2499_s1 + $0x70] sm:$0xff]   ;;  %v2058_v3 = vmov 0   ;;  %v1917_v5 = vld [vmem:[%s2499_s1 + $0x68] sm:$0xff]   ;;  %s435_s22 = scalar_select %p434_p10, %s2156_s12, 1  ;;  %v2059_v50 = vmov 0.0  }
  0x19   : > { %v1914_v1 = vld [vmem:[%s2499_s1 + $0x38] sm:$0xff]   ;;  %1744 = vmatprep.subr.bf16.mxu0 %v1913_v0  ;;  %441 = vst [vmem:[#allocation2 + $0x4] sm:$0xf] %v2058_v3  ;;  %v1916_v4 = vld [vmem:[%s2499_s1 + $0x30] sm:$0xff]   ;;  %v1918_v6 = vld [vmem:[%s2499_s1 + $0x28] sm:$0xff]   ;;  %vm2060_vm1 = vmmov 0   ;;  %p1998_p12 = pnand %p1997_p11, %p2173_p5 }
  0x1a   : > { %1745 = vmatpush3.bf16.msra.mxu0 %v1914_v1  ;;  %v1919_v7 = vld [vmem:[%s2499_s1 + $0x60] sm:$0xff]   ;;  %s1711_s18 = sshll.u32 %s435_s22, 4  ;;  %v1921_v9 = vld [vmem:[%s2499_s1 + $0x58] sm:$0xff]   ;;  %v1923_v11 = vld [vmem:[%s2499_s1 + $0x50] sm:$0xff]   ;;  %vm513_vm0 = vsmask.f32 4352  ;;  %s2463_s22 = scalar_lea.hbm %s2511_s13, %s1708_s16 }
  0x1b   : > { %1746 = vmatprep.subr.bf16.mxu0 %v1915_v2  ;;  %v1920_v8 = vld [vmem:[%s2499_s1 + $0x20] sm:$0xff]   ;;  %s438_s23 = scalar_lea.vmem %s2498_s0, %s1711_s18  ;;  %v1922_v10 = vld [vmem:[%s2499_s1 + $0x18] sm:$0xff]   ;;  %v1924_v14 = vld [vmem:[%s2499_s1 + $0x10] sm:$0xff]   ;;  %vm1098_vm2 = vcmask 1044480   ;;  %s1461_s18 = sld [smem:[#allocation3]]  ;;  %vm1533_vm3 = vcmask 122880  }
  0x1c   : > { %v442_v12 = vld [vmem:[%s438_s23] sm:$0xff]  ;;  %v443_v13 = vld [vmem:[%s438_s23 + $0x8] sm:$0xff]  ;;  %v1931_v47 = vld [vmem:[%s2501_s3 + $0x78] sm:$0xff]   ;;  %p1999_p13 = pneg %p1998_p12  ;;  %s2061_s12 = smov [#allocation4]  }
  0x1d   : > { %v2224_v15 = vpack.c.bf16 %v443_v13, %v442_v12  ;;  %v1925_v16 = vld [vmem:[%s2499_s1 + $0x48] sm:$0xff]   ;;  %v1927_v18 = vld [vmem:[%s2499_s1 + $0x40] sm:$0xff]   ;;  %v1932_v48 = vld [vmem:[%s2501_s3 + $0x38] sm:$0xff]   ;;  %1766 = vmatprep.subr.bf16.mxu1 %v1931_v47  ;;  %s2000_s14 = sshll.u32 %s2061_s12, 4  ;;  %s2001_s14 = int_to_ptr.vmem [resolvable:$false] %s2000_s14 }
  0x1e   : > { %1747 = vmatpush3.bf16.msra.mxu0 %v1916_v4  ;;  %v1926_v17 = vld [vmem:[%s2499_s1 + $0x8] sm:$0xff]   ;;  %v1928_v20 = vld [vmem:[%s2499_s1] sm:$0xff]   ;;  %v1933_v49 = vld [vmem:[%s2503_s5 + $0x38] sm:$0xff]   ;;  %1767 = vmatpush3.bf16.msra.mxu1 %v1932_v48  ;;  %s2002_s29 = scalar_lea.vmem %s2001_s14, 32  ;;  %p2003_p0 = scmp.lt.s32.totalorder %s1549_s21, %s2001_s14 }
  0x1f   : > { %1748 = vmatprep.subr.bf16.mxu0 %v1917_v5  ;;  %1740 = vst [vmem:[#allocation2 + $0x8] sm:$0xff] %v2224_v15   ;;  %v1934_v51 = vld [vmem:[%s2501_s3 + $0x70] sm:$0xff]   ;;  %v1937_v54 = vld [vmem:[%s2501_s3 + $0x68] sm:$0xff]   ;;  %v1940_v57 = vld [vmem:[%s2501_s3 + $0x60] sm:$0xff]   ;;  %p2004_p1 = scmp.lt.s32.totalorder %s2002_s29, %s1996_s26 }
  0x20   : > { %v454_v19 = vld [vmem:[#allocation2 + $0x4] sm:$0x8]  ;;  %v1935_v52 = vld [vmem:[%s2501_s3 + $0x30] sm:$0xff]   ;;  %1768 = vmatprep.subr.bf16.mxu1 %v1934_v51  ;;  %v1938_v55 = vld [vmem:[%s2501_s3 + $0x28] sm:$0xff]  }
  0x21   : > { %v1936_v53 = vld [vmem:[%s2503_s5 + $0x30] sm:$0xff]   ;;  %v1939_v56 = vld [vmem:[%s2503_s5 + $0x28] sm:$0xff]   ;;  %v1941_v58 = vld [vmem:[%s2501_s3 + $0x20] sm:$0xff]   ;;  %p2005_p2 = por %p2004_p1, %p2003_p0 }
  0x22   : > { %1749 = vmatpush3.bf16.msra.mxu0 %v1918_v6  ;;  %1769 = vmatpush3.bf16.msra.mxu1 %v1935_v52  ;;  %v1942_v59 = vld [vmem:[%s2503_s5 + $0x20] sm:$0xff]   ;;  %v1943_v60 = vld [vmem:[%s2501_s3 + $0x58] sm:$0xff]   ;;  %v1946_v63 = vld [vmem:[%s2501_s3 + $0x50] sm:$0xff]  }
  0x23   : > { %1750 = vmatprep.subr.bf16.mxu0 %v1919_v7  ;;  %1770 = vmatprep.subr.bf16.mxu1 %v1937_v54  ;;  %v1944_v61 = vld [vmem:[%s2501_s3 + $0x18] sm:$0xff]   ;;  %v1947_v0 = vld [vmem:[%s2501_s3 + $0x10] sm:$0xff]   ;;  %v1949_v2 = vld [vmem:[%s2501_s3 + $0x48] sm:$0xff]   ;;  %p2006_p3 = pnand %p2005_p2, %p1999_p13 }
  0x24   : > { %v1945_v62 = vld [vmem:[%s2503_s5 + $0x18] sm:$0xff]   ;;  %v1948_v1 = vld [vmem:[%s2503_s5 + $0x10] sm:$0xff]   ;;  %v1950_v3 = vld [vmem:[%s2501_s3 + $0x8] sm:$0xff]  }
  0x25   : > { %v1951_v4 = vld [vmem:[%s2503_s5 + $0x8] sm:$0xff]   ;;  %v1952_v5 = vld [vmem:[%s2501_s3 + $0x40] sm:$0xff]   ;;  %v1958_v47 = vld [vmem:[%s2505_s7 + $0x78] sm:$0xff]  }
  0x26   : > { %1751 = vmatpush3.bf16.msra.mxu0 %v1920_v8  ;;  %v455_v21 = vld [vmem:[#allocation2 + $0x8] sm:$0xf]  ;;  %v456_v22 = vld [vmem:[#allocation2 + $0xc] sm:$0xf]  ;;  %1771 = vmatpush3.bf16.msra.mxu1 %v1938_v55  ;;  %v1953_v6 = vld [vmem:[%s2501_s3] sm:$0xff]  }
  0x27   : > { %1752 = vmatprep.subr.bf16.mxu0 %v1921_v9  ;;  %v1613_v23 = vcombine.low %v455_v21, %v456_v22  ;;  %v1611_v24 = vcombine.low %v454_v19, %v455_v21  ;;  %v1612_v25 = vcombine.low %v456_v22, %v456_v22  ;;  %1772 = vmatprep.subr.bf16.mxu1 %v1940_v57  ;;  %v1954_v7 = vld [vmem:[%s2503_s5] sm:$0xff]   ;;  %v1960_v52 = vld [vmem:[%s2505_s7 + $0x70] sm:$0xff]   ;;  %v1963_v57 = vld [vmem:[%s2505_s7 + $0x28] sm:$0xff]  }
  0x28   : > { %v691_v21 = vld [vmem:[#allocation2 + $0x4] sm:$0x8] }
  0x29   : > { %v467_v26 = vshrl.u32 %v1613_v23, 16  ;;  %v470_v27 = vshll.u32 %v1613_v23, 16  ;;  %v515_v28 = vshrl.u32 %v1611_v24, 16  ;;  %v518_v29 = vshll.u32 %v1611_v24, 16 }
  0x2a   : > { %1753 = vmatpush3.bf16.msra.mxu0 %v1922_v10  ;;  %v523_v30 = vshrl.u32 %v1612_v25, 16  ;;  %v526_v31 = vshll.u32 %v1612_v25, 16  ;;  %1773 = vmatpush3.bf16.msra.mxu1 %v1941_v58  ;;  %v1964_v58 = vld [vmem:[%s2505_s7 + $0x60] sm:$0xff]  }
  0x2b   : > { %1754 = vmatprep.subr.bf16.mxu0 %v1923_v11  ;;  %v469_v32 = vrot.slane %v467_v26, 4  ;;  %v472_v33 = vrot.slane %v470_v27, 5  ;;  %v517_v34 = vrot.slane %v515_v28, 3  ;;  %v520_v35 = vrot.slane %v518_v29, 4  ;;  %1774 = vmatprep.subr.bf16.mxu1 %v1943_v60  ;;  %v1614_v11 = vld [vmem:[%s2500_s2] ss:$0 sm:$0xff] }
  0x2c   : > { %v525_v36 = vrot.slane %v523_v30, 3  ;;  %v528_v37 = vrot.slane %v526_v31, 4  ;;  %v1966_v60 = vld [vmem:[%s2505_s7 + $0x58] sm:$0xff]  }
  0x2d   : > { %v473_v38 = vor.u32 %v472_v33, %v469_v32  ;;  %v521_v41 = vor.u32 %v520_v35, %v517_v34 }
  0x2e   : > { %1755 = vmatpush3.bf16.msra.mxu0 %v1924_v14  ;;  %v529_v42 = vor.u32 %v528_v37, %v525_v36  ;;  %1775 = vmatpush3.bf16.msra.mxu1 %v1944_v61  ;;  %v1967_v61 = vld [vmem:[%s2505_s7 + $0x18] sm:$0xff]  }
  0x2f   : > { %1756 = vmatprep.subr.bf16.mxu0 %v1925_v16  ;;  %v532_v39 = vshrl.u32 %v473_v38, 16  ;;  %v535_v40 = vshll.u32 %v473_v38, 16  ;;  %1776 = vmatprep.subr.bf16.mxu1 %v1946_v63  ;;  %v1969_v63 = vld [vmem:[%s2505_s7 + $0x10] sm:$0xff]  }
  0x30   : > { %v530_v46 = vsel %vm513_vm0, %v521_v41, %v529_v42 }
  0x31   : > { %v534_v43 = vrot.slane %v532_v39, 3  ;;  %v537_v44 = vrot.slane %v535_v40, 4 }
  0x32   : > { %1757 = vmatpush3.bf16.msra.mxu0 %v1926_v17  ;;  %1777 = vmatpush3.bf16.msra.mxu1 %v1947_v0  ;;  %v1970_v0 = vld [vmem:[%s2505_s7 + $0x48] sm:$0xff]  }
  0x33   : > { %1758 = vmatprep.subr.bf16.mxu0 %v1927_v18  ;;  %v538_v45 = vor.u32 %v537_v44, %v534_v43  ;;  %1778 = vmatprep.subr.bf16.mxu1 %v1949_v2  ;;  %v1972_v2 = vld [vmem:[%s2505_s7 + $0x40] sm:$0xff]  }
  0x35   : > { %670 = vmatprep.mubr.bf16.mxu0 %v538_v45 }
  0x36   : > { %1759 = vmatpush3.bf16.msra.mxu0 %v1928_v20  ;;  %1779 = vmatpush3.bf16.msra.mxu1 %v1950_v3  ;;  %v1973_v3 = vld [vmem:[%s2505_s7] sm:$0xff]  }
  0x37   : > { %1844 = vmatprep.subr.bf16.mxu0 %v2059_v50  ;;  %1780 = vmatprep.subr.bf16.mxu1 %v1952_v5  ;;  %v1978_v5 = vld [vmem:[%s2507_s9 + $0x38] sm:$0xff]  }
  0x39   : > { %671 = vmatmul.mubr.bf16.vlgmr.msra.gmra.mxu0 %v530_v46 }
  0x3a   : > { %1845 = vmatpush3.bf16.msra.mxu0 %v1933_v49  ;;  %1781 = vmatpush3.bf16.msra.mxu1 %v1953_v6  ;;  %v1959_v49 = vld [vmem:[%s2505_s7 + $0x38] sm:$0xff]  }
  0x3b   : > { %1846 = vmatprep.subr.bf16.mxu0 %v2059_v50  ;;  %1860 = vmatprep.mubr.msk.bf16.mxu0 %vm2060_vm1, %v2059_v50 }
  0x3c   : > { %1797 = vmatprep.subr.bf16.mxu1 %v1958_v47  ;;  %v1992_v47 = vld [vmem:[%s2507_s9] sm:$0xff]  }
  0x3e   : > { %1847 = vmatpush3.bf16.msra.mxu0 %v1936_v53  ;;  %v1961_v53 = vld [vmem:[%s2505_s7 + $0x30] sm:$0xff]  }
  0x3f   : > { %1848 = vmatprep.subr.bf16.mxu0 %v2059_v50 }
  0x42   : > { %1849 = vmatpush3.bf16.msra.mxu0 %v1939_v56  ;;  %v1962_v56 = vld [vmem:[%s2505_s7 + $0x68] sm:$0xff]  }
  0x43   : > { %1850 = vmatprep.subr.bf16.mxu0 %v2059_v50 }
  0x46   : > { %1851 = vmatpush3.bf16.msra.mxu0 %v1942_v59  ;;  %v1965_v59 = vld [vmem:[%s2505_s7 + $0x20] sm:$0xff]  }
  0x47   : > { %1852 = vmatprep.subr.bf16.mxu0 %v2059_v50 }
  0x4a   : > { %1853 = vmatpush3.bf16.msra.mxu0 %v1945_v62  ;;  %v1968_v62 = vld [vmem:[%s2505_s7 + $0x50] sm:$0xff]  }
  0x4b   : > { %1854 = vmatprep.subr.bf16.mxu0 %v2059_v50 }
  0x4e   : > { %1855 = vmatpush3.bf16.msra.mxu0 %v1948_v1  ;;  %v1971_v1 = vld [vmem:[%s2505_s7 + $0x8] sm:$0xff]  }
  0x4f   : > { %1856 = vmatprep.subr.bf16.mxu0 %v2059_v50 }
  0x52   : > { %1857 = vmatpush3.bf16.msra.mxu0 %v1951_v4  ;;  %v1977_v4 = vld [vmem:[%s2507_s9 + $0x78] sm:$0xff]  }
  0x53   : > { %1858 = vmatprep.subr.bf16.mxu0 %v2059_v50 }
  0x56   : > { %1859 = vmatpush3.bf16.msra.mxu0 %v1954_v7  ;;  %v1636_v7 = vld [vmem:[%s2502_s4] ss:$0 sm:$0xff] }
  0x57   : > { %1819 = vmatprep.subr.bf16.mxu0 %v1977_v4 }
  0x59   : > { %1861 = vmatmul.mubr.bf16.vlgmr.msra.gmra.mxu0 %v2224_v15 }
  0x5a   : > { %1820 = vmatpush3.bf16.msra.mxu0 %v1978_v5 }
  0xf9   : > { %v1760_v8 = vpop.f32.mrf.mxu0 }
  0xfb   : > { %v1761_v9 = vpop.f32.mrf.mxu0 }
  0xfc   : > { %v1762_v10 = vadd.f32 %v1761_v9, %v1760_v8 }
  0xfd   : > { %v1763_v12 = vpop.f32.mrf.mxu0 }
  0xfe   : > { %v673_v14 = vadd.f32 %v1762_v10, %v1614_v11  ;;  %v1653_v10 = vld [vmem:[%s2504_s6] ss:$0 sm:$0xff] }
  0xff   : > { %v1764_v13 = vpop.f32.mrf.mxu0 }
 0x100   : > { %v1765_v16 = vadd.f32 %v1764_v13, %v1763_v12  ;;  %v679_v18 = vmax.f32 %v673_v14, 0.0 }
 0x102   : > { %v676_v17 = vadd.f32 %v1765_v16, %v1614_v11 }
 0x104   : > { %v680_v19 = vmax.f32 %v676_v17, 0.0 }
 0x106   : > { %v1728_v20 = vpack.c.bf16 %v680_v19, %v679_v18 }
 0x108   : > { %1741 = vst [vmem:[#allocation2 + $0x8] sm:$0xff] %v1728_v20  }
 0x10f   : > { %v692_v22 = vld [vmem:[#allocation2 + $0x8] sm:$0xf]  ;;  %v693_v23 = vld [vmem:[#allocation2 + $0xc] sm:$0xf] }
 0x110   : > { %v1635_v15 = vcombine.low %v692_v22, %v693_v23  ;;  %v1633_v24 = vcombine.low %v691_v21, %v692_v22  ;;  %v1634_v25 = vcombine.low %v693_v23, %v693_v23 }
 0x112   : > { %v704_v26 = vshrl.u32 %v1635_v15, 16  ;;  %v707_v27 = vshll.u32 %v1635_v15, 16  ;;  %v751_v28 = vshrl.u32 %v1633_v24, 16  ;;  %v754_v29 = vshll.u32 %v1633_v24, 16 }
 0x113   : > { %v759_v30 = vshrl.u32 %v1634_v25, 16  ;;  %v762_v31 = vshll.u32 %v1634_v25, 16  ;;  %v1043_v25 = vld [vmem:[#allocation2 + $0x4] sm:$0x8] }
 0x114   : > { %v706_v32 = vrot.slane %v704_v26, 4  ;;  %v709_v33 = vrot.slane %v707_v27, 5  ;;  %v753_v34 = vrot.slane %v751_v28, 3  ;;  %v756_v36 = vrot.slane %v754_v29, 4 }
 0x115   : > { %v761_v37 = vrot.slane %v759_v30, 3  ;;  %v764_v38 = vrot.slane %v762_v31, 4 }
 0x116   : > { %v710_v35 = vor.u32 %v709_v33, %v706_v32  ;;  %v757_v43 = vor.u32 %v756_v36, %v753_v34  ;;  %v1979_v34 = vld [vmem:[%s2507_s9 + $0x70] sm:$0xff]   ;;  %v1981_v36 = vld [vmem:[%s2507_s9 + $0x68] sm:$0xff]  }
 0x117   : > { %v765_v44 = vor.u32 %v764_v38, %v761_v37  ;;  %1821 = vmatprep.subr.bf16.mxu0 %v1979_v34  ;;  %v1982_v37 = vld [vmem:[%s2507_s9 + $0x28] sm:$0xff]   ;;  %v1983_v38 = vld [vmem:[%s2507_s9 + $0x60] sm:$0xff]  }
 0x118   : > { %v768_v39 = vshrl.u32 %v710_v35, 16  ;;  %v771_v40 = vshll.u32 %v710_v35, 16  ;;  %v1980_v35 = vld [vmem:[%s2507_s9 + $0x30] sm:$0xff]  }
 0x119   : > { %v766_v46 = vsel %vm513_vm0, %v757_v43, %v765_v44  ;;  %v1022_v48 = vpop.f32.mrf.mxu0  ;;  %1822 = vmatpush3.bf16.msra.mxu0 %v1980_v35  ;;  %v1988_v43 = vld [vmem:[%s2507_s9 + $0x10] sm:$0xff]   ;;  %v1989_v44 = vld [vmem:[%s2507_s9 + $0x48] sm:$0xff]  }
 0x11a   : > { %v770_v41 = vrot.slane %v768_v39, 3  ;;  %v773_v42 = vrot.slane %v771_v40, 4  ;;  %v1023_v14 = vadd.f32 %v1653_v10, %v1022_v48  ;;  %1823 = vmatprep.subr.bf16.mxu0 %v1981_v36  ;;  %v1984_v39 = vld [vmem:[%s2507_s9 + $0x20] sm:$0xff]   ;;  %v1985_v40 = vld [vmem:[%s2507_s9 + $0x58] sm:$0xff]  }
 0x11b   : > { %v1862_v51 = vpop.f32.mrf.mxu0 }
 0x11c   : > { %v774_v45 = vor.u32 %v773_v42, %v770_v41  ;;  %v1986_v41 = vld [vmem:[%s2507_s9 + $0x18] sm:$0xff]   ;;  %v1987_v42 = vld [vmem:[%s2507_s9 + $0x50] sm:$0xff]  }
 0x11d   : > { %v1025_v54 = vpop.f32.mrf.mxu0  ;;  %1824 = vmatpush3.bf16.msra.mxu0 %v1982_v37 }
 0x11e   : > { %906 = vmatprep.mubr.bf16.mxu1 %v774_v45  ;;  %v1026_v20 = vadd.f32 %v1653_v10, %v1025_v54  ;;  %1825 = vmatprep.subr.bf16.mxu0 %v1983_v38  ;;  %v1990_v45 = vld [vmem:[%s2507_s9 + $0x8] sm:$0xff]  }
 0x11f   : > { %907 = vmatmul.mubr.bf16.vlgmr.msra.gmra.mxu1 %v766_v46  ;;  %v1863_v55 = vpop.f32.mrf.mxu0  ;;  %v1991_v46 = vld [vmem:[%s2507_s9 + $0x40] sm:$0xff]  }
 0x120   : > { %1798 = vmatpush3.bf16.msra.mxu1 %v1959_v49 }
 0x121   : > { %1799 = vmatprep.subr.bf16.mxu1 %v1960_v52  ;;  %1826 = vmatpush3.bf16.msra.mxu0 %v1984_v39  ;;  %v1667_v52 = vld [vmem:[%s2506_s8] ss:$0 sm:$0xff] }
 0x122   : > { %1827 = vmatprep.subr.bf16.mxu0 %v1985_v40 }
 0x124   : > { %1800 = vmatpush3.bf16.msra.mxu1 %v1961_v53 }
 0x125   : > { %1801 = vmatprep.subr.bf16.mxu1 %v1962_v56  ;;  %1828 = vmatpush3.bf16.msra.mxu0 %v1986_v41 }
 0x126   : > { %1829 = vmatprep.subr.bf16.mxu0 %v1987_v42 }
 0x128   : > { %1802 = vmatpush3.bf16.msra.mxu1 %v1963_v57 }
 0x129   : > { %1803 = vmatprep.subr.bf16.mxu1 %v1964_v58  ;;  %1830 = vmatpush3.bf16.msra.mxu0 %v1988_v43 }
 0x12a   : > { %1831 = vmatprep.subr.bf16.mxu0 %v1989_v44 }
 0x12c   : > { %1804 = vmatpush3.bf16.msra.mxu1 %v1965_v59 }
 0x12d   : > { %1805 = vmatprep.subr.bf16.mxu1 %v1966_v60  ;;  %1832 = vmatpush3.bf16.msra.mxu0 %v1990_v45 }
 0x12e   : > { %1833 = vmatprep.subr.bf16.mxu0 %v1991_v46 }
 0x130   : > { %1806 = vmatpush3.bf16.msra.mxu1 %v1967_v61  ;;  %v1255_v61 = vld [vmem:[#allocation2 + $0x4] sm:$0x8] }
 0x131   : > { %1807 = vmatprep.subr.bf16.mxu1 %v1968_v62  ;;  %1834 = vmatpush3.bf16.msra.mxu0 %v1992_v47 }
 0x134   : > { %1808 = vmatpush3.bf16.msra.mxu1 %v1969_v63 }
 0x135   : > { %1809 = vmatprep.subr.bf16.mxu1 %v1970_v0 }
 0x138   : > { %1810 = vmatpush3.bf16.msra.mxu1 %v1971_v1 }
 0x139   : > { %1811 = vmatprep.subr.bf16.mxu1 %v1972_v2 }
 0x13c   : > { %1812 = vmatpush3.bf16.msra.mxu1 %v1973_v3 }
 0x13d   : > { %1864 = vmatprep.subr.mxu1 %v2059_v50 }
 0x1df   : > { %v1782_v6 = vpop.f32.mrf.mxu1 }
 0x1e1   : > { %v1783_v8 = vpop.f32.mrf.mxu1 }
 0x1e2   : > { %v1784_v9 = vadd.f32 %v1783_v8, %v1782_v6 }
 0x1e3   : > { %v1785_v11 = vpop.f32.mrf.mxu1 }
 0x1e4   : > { %v909_v12 = vadd.f32 %v1784_v9, %v1636_v7  ;;  %v1690_v9 = vld [vmem:[%s2508_s10] ss:$0 sm:$0xff] }
 0x1e5   : > { %v1786_v13 = vpop.f32.mrf.mxu1 }
 0x1e6   : > { %v915_v16 = vmax.f32 %v909_v12, 0.0  ;;  %v1787_v17 = vadd.f32 %v1786_v13, %v1785_v11 }
 0x1e8   : > { %v912_v18 = vadd.f32 %v1787_v17, %v1636_v7  ;;  %v2388_v19 = vadd.f32 %v1023_v14, %v915_v16 }
 0x1ea   : > { %v916_v21 = vmax.f32 %v912_v18, 0.0  ;;  %v1031_v23 = vmax.f32 %v2388_v19, 0.0 }
 0x1ec   : > { %v2390_v22 = vadd.f32 %v1026_v20, %v916_v21 }
 0x1ee   : > { %v1032_v15 = vmax.f32 %v2390_v22, 0.0 }
 0x1f0   : > { %v1733_v24 = vpack.c.bf16 %v1032_v15, %v1031_v23 }
 0x1f2   : > { %1742 = vst [vmem:[#allocation2 + $0x8] sm:$0xff] %v1733_v24  }
 0x1f9   : > { %v1044_v26 = vld [vmem:[#allocation2 + $0x8] sm:$0xf]  ;;  %v1046_v27 = vld [vmem:[#allocation2 + $0xc] sm:$0xf] }
 0x1fa   : > { %v1666_v28 = vcombine.low %v1044_v26, %v1046_v27  ;;  %v1664_v29 = vcombine.low %v1043_v25, %v1044_v26  ;;  %v1976_v30 = vld [vmem:[#allocation2 + $0xc] ss:$0 sps:$4 sm:$0x77]   ;;  %v1460_v25 = vld [vmem:[%s2509_s11] sm:$0x1]  ;;  %v1462_v26 = vstv %s1461_s18 }
 0x1fb   : > { %v1100_v32 = vrot.slane %v1976_v30, 3 }
 0x1fc   : > { %1234 = vmatprep.mubr.bf16.mxu1 %v1666_v28  ;;  %v1099_v31 = vrot.slane %v1664_v29, 3 }
 0x1fe   : > { %v1101_v33 = vsel %vm1098_vm2, %v1099_v31, %v1100_v32 }
 0x1ff   : > { %1235 = vmatmul.mubr.bf16.vlgmr.msra.gmra.mxu1 %v1101_v33 }
 0x200   : > { %1868 = vmatprep.mubr.msk.f32.mxu1 %vm2060_vm1, %v2059_v50 }
 0x2bf   : > { %v1813_v48 = vpop.f32.mrf.mxu1 }
 0x2c1   : > { %v1814_v49 = vpop.f32.mrf.mxu1 }
 0x2c2   : > { %v1815_v51 = vadd.f32 %v1814_v49, %v1813_v48 }
 0x2c3   : > { %v1816_v53 = vpop.f32.mrf.mxu1 }
 0x2c4   : > { %v1237_v55 = vadd.f32 %v1815_v51, %v1667_v52 }
 0x2c5   : > { %v1817_v54 = vpop.f32.mrf.mxu1 }
 0x2c6   : > { %v1818_v56 = vadd.f32 %v1817_v54, %v1816_v53  ;;  %v1243_v58 = vmax.f32 %v1237_v55, 0.0 }
 0x2c8   : > { %v1240_v57 = vadd.f32 %v1818_v56, %v1667_v52 }
 0x2ca   : > { %v1244_v59 = vmax.f32 %v1240_v57, 0.0 }
 0x2cc   : > { %v1738_v60 = vpack.c.bf16 %v1244_v59, %v1243_v58 }
 0x2ce   : > { %1743 = vst [vmem:[#allocation2 + $0x8] sm:$0xff] %v1738_v60  }
 0x2d5   : > { %v1256_v62 = vld [vmem:[#allocation2 + $0x8] sm:$0xf]  ;;  %v1258_v63 = vld [vmem:[#allocation2 + $0xc] sm:$0xf] }
 0x2d6   : > { %v1687_v0 = vcombine.low %v1255_v61, %v1256_v62  ;;  %v1689_v1 = vcombine.low %v1256_v62, %v1258_v63  ;;  %v1995_v2 = vld [vmem:[#allocation2 + $0xc] ss:$0 sps:$4 sm:$0x77]  }
 0x2d7   : > { %v1311_v4 = vrot.slane %v1995_v2, 3 }
 0x2d8   : > { %v1310_v3 = vrot.slane %v1687_v0, 3  ;;  %1445 = vmatprep.mubr.bf16.mxu0 %v1689_v1 }
 0x2da   : > { %v1312_v5 = vsel %vm1098_vm2, %v1310_v3, %v1311_v4 }
 0x2db   : > { %1446 = vmatmul.mubr.bf16.vlgmr.msra.gmra.mxu0 %v1312_v5 }
 0x39b   : > { %v1835_v6 = vpop.f32.mrf.mxu0 }
 0x39d   : > { %v1836_v7 = vpop.f32.mrf.mxu0 }
 0x39e   : > { %v1837_v8 = vadd.f32 %v1836_v7, %v1835_v6 }
 0x39f   : > { %v1838_v10 = vpop.f32.mrf.mxu0 }
 0x3a0   : > { %v1448_v12 = vadd.f32 %v1837_v8, %v1690_v9 }
 0x3a1   : > { %v1839_v11 = vpop.f32.mrf.mxu0 }
 0x3a2   : > { %v1840_v13 = vadd.f32 %v1839_v11, %v1838_v10  ;;  %v1454_v16 = vmax.f32 %v1448_v12, 0.0 }
 0x3a4   : > { %v1451_v14 = vadd.f32 %v1840_v13, %v1690_v9  ;;  %v1456_v20 = vadd.f32 %v1454_v16, %v1031_v23 }
 0x3a6   : > { %v1455_v17 = vmax.f32 %v1451_v14, 0.0  ;;  %v1458_v24 = vmax.f32 %v1456_v20, 0.0 }
 0x3a8   : > { %v1457_v18 = vadd.f32 %v1455_v17, %v1032_v15 }
 0x3aa   : > { %v1459_v21 = vmax.f32 %v1457_v18, 0.0 }
 0x3ac   : > { %1865 = vmatpush3.xpose.msra.mxu1 %v1459_v21 }
 0x3ad   : > { %1866 = vmatprep.subr.mxu1 %v2059_v50 }
 0x3b0   : > { %1867 = vmatpush3.xpose.msra.mxu1 %v1458_v24 }
 0x3b3   : > { %1869 = vmatmul.mubr.f32.vlgmr.msra.gmra.mxu1 %v1460_v25 }
 0x473   : > { %v1529_v19 = vpop.f32.mrf.mxu1 }
 0x474   : > { %v1530_v22 = vadd.f32 %v1529_v19, %v1462_v26 }
 0x475   : > { %v1870_v50 = vpop.f32.mrf.mxu1 }
 0x476   : > { %1534 = vst.msk [vmem:[%s433_s17] sm:$0x1] %vm1533_vm3, %v1530_v22 }
 0x477   : > { %2009 = shalt.err (!%p2006_p3)
}
 0x478   : > { %s2010_s15 = scalar_lea.hbm %s2463_s22, 16  ;;  %s2014_s16 = scalar_lea.hbm %s2511_s13, 32 }
 0x479   : > { %p2011_p4 = scmp.ne.s32.totalorder %s2463_s22, %s2010_s15  ;;  %p2015_p9 = scmp.lt.s32.totalorder %s2463_s22, %s2511_s13 }
 0x47a   : > { %p2016_p10 = scmp.lt.s32.totalorder %s2014_s16, %s2010_s15 }
 0x47b   : > { %p2012_p7 = pnand %p2011_p4, %p2173_p5 }
 0x47c   : > { %p2017_p11 = por %p2016_p10, %p2015_p9 }
 0x47d   : > { %p2013_p8 = pneg %p2012_p7 }
 0x47f   : > { %p2018_p12 = pnand %p2017_p11, %p2013_p8 }
 0x481   : > { %2021 = shalt.err (!%p2018_p12)
}
 0x482   : > { %1871 = dma.vmem_to_hbm [thread:$0]  (%p2173_p5), %s1549_s21, 16, %s2463_s22, %s1536_s25  }
 0x483 PF: > { %p1877_p13 = scmp.ge.s32.totalorder %s2056_s30, 2  ;;  %s1560_s26 = sand.u32 1, %s2044_s27  }
 0x484   : > { %s1561_s12 = scalar_lea.sflag [#allocation5], %s1560_s26 }
 0x485   : > { %p1874_p0 = pnand %p1877_p13, %p2177_p6 }
 0x487   : > { %p1875_p1 = pneg %p1874_p0 }
 0x489   : > { %2039 = dma.done.wait (%p1875_p1), %s1561_s12, 16  }
 0x48a   : > { %2041 = vsyncadd (%p1875_p1), %s1561_s12, 4294967280  ;;  %s2523_s30 = sld [smem:[#allocation8_spill]]  ;;  %s2526_s27 = smov %s2048_s28 }
 0x48b   : > { %s2524_s14 = sld [smem:[#allocation7_spill]] }
 0x48c   : > { %s2525_s29 = sld [smem:[#allocation9_spill]] }
 0x490   : > { %p24_p2 = scmp.ge.s32.totalorder %s2523_s30, 4  }
 0x491   : > { %s2527_s28 = smov %s2524_s14 }
 0x492   :  { %26 = sbr.rel (!%p24_p2) target bundleno = 5 (0x5), region = 107 }
 0x497   :  { %1565 = vsyncpa [#allocation5], 1 }
 0x498   :  { %1567 = vsyncpa [#allocation5 + $0x1], 1 }

</bundles_post_ra>
